<compile_context>
chip_gen: v7x
topology: tpu7x:2x2x1
jax: 0.10.0
libtpu: 0.0.40
codegen_flags: <defaults>
</compile_context>

<pallas_src>
import functools

import jax
import jax.numpy as jnp
from jax import lax
from jax.experimental import pallas as pl
from jax.experimental.pallas import tpu as pltpu

_LANE = 128


def _round_up(x, m):
    return (x + m - 1) // m * m


def _mlp_kernel(x_ref, *refs, num_layers, final_act, out_dim):
    """Runs one row-tile of the batch through the whole (padded) MLP.

    x_ref             : (TM, K0p)   bf16 padded activations
    refs[2i], [2i+1]  : (Kip, Nip)  bf16 weight ([in, out]) / (1, Nip) f32 bias
    refs[-1]          : (TM, NLp)   f32 output
    """
    o_ref = refs[-1]
    h = x_ref[...]                                   # bf16
    # Static unroll over layers; activation never leaves VMEM/vregs.
    for i in range(num_layers):
        w_ref = refs[2 * i]
        b_ref = refs[2 * i + 1]
        y = jnp.dot(h, w_ref[...], preferred_element_type=jnp.float32)
        y = y + b_ref[...]                           # f32 bias add (VPU math in f32)
        if i < num_layers - 1:
            h = jnp.maximum(y, 0.0).astype(jnp.bfloat16)   # bf16 storage only
        else:
            h = y                                    # final pre-activation (f32)

    if final_act == "sigmoid":
        # Numerically stable: no exp() overflow; reciprocal on the EUP slot.
        e = jnp.exp(-jnp.abs(h))
        s = pl.reciprocal(1.0 + e, approx=True)
        h = jnp.where(h >= 0.0, s, 1.0 - s)
    elif final_act == "relu":
        h = jnp.maximum(h, 0.0)
    elif final_act == "softmax":
        # Mask padded lanes so they don't contribute to the normalizer.
        col = lax.broadcasted_iota(jnp.int32, h.shape, 1)
        h = jnp.where(col < out_dim, h, -jnp.inf)
        m = jnp.max(h, axis=-1, keepdims=True)
        e = jnp.exp(h - m)
        h = e * pl.reciprocal(jnp.sum(e, axis=-1, keepdims=True), approx=True)
    # final_act is None -> identity
    o_ref[...] = h.astype(o_ref.dtype)


def init_mlp_params(layer_sizes, key):
    """PyTorch-Linear-style init (U(-1/sqrt(in), 1/sqrt(in))); weights stored
    pre-transposed as [in, out] so the kernel computes x @ W + b."""
    params = []
    for fan_in, fan_out in layer_sizes:
        key, kw, kb = jax.random.split(key, 3)
        bound = 1.0 / jnp.sqrt(fan_in)
        w = jax.random.uniform(kw, (fan_in, fan_out), jnp.float32, -bound, bound)
        b = jax.random.uniform(kb, (fan_out,), jnp.float32, -bound, bound)
        params.append((w, b))
    return params


def _pack_params(params):
    """Zero-pad every layer independently to lane-dense (Kp_i, Np_i)."""
    ws, bs = [], []
    for w, b in params:
        k, n = w.shape
        kp, np_ = _round_up(k, _LANE), _round_up(n, _LANE)
        wp = jnp.zeros((kp, np_), jnp.float32).at[:k, :n].set(w)
        bp = jnp.zeros((1, np_), jnp.float32).at[0, :n].set(b)
        ws.append(wp.astype(jnp.bfloat16))   # bf16 weights for the MXU
        bs.append(bp)                        # f32 bias
    return ws, bs


def _pick_tm(m):
    """Row tile: multiple of 16 (dense bf16 sublane packing), capped at 256,
    and >= 2 grid steps for moderate batches so v7x's 2 TCs both get work.
    (On v5e/v6e with 128 MiB VMEM the cap could be raised to 512.)"""
    if m <= 16:
        return 16
    return min(_round_up(pl.cdiv(m, 2), 16), 256)


def mlp_forward(x, params, activation="sigmoid"):
    """Replicates MLP.forward (inference / eval mode). x: [batch, in_features]."""
    # TODO(synk): F.dropout after every 4th sub-layer is identity in eval mode;
    #             training-mode stochastic dropout is not implemented here.
    ws, bs = _pack_params(params)
    num_layers = len(params)
    M, K = x.shape
    n_out = params[-1][0].shape[1]
    k0p = ws[0].shape[0]        # padded input width
    nlp = ws[-1].shape[1]       # padded output width (only lanes we write back)

    TM = _pick_tm(M)
    M_pad = _round_up(M, TM)
    xp = jnp.zeros((M_pad, k0p), jnp.bfloat16).at[:M, :K].set(x.astype(jnp.bfloat16))

    # VMEM budget: single-buffered weights/biases + double-buffered in/out tiles.
    w_bytes = sum(int(w.size) * 2 for w in ws)
    b_bytes = sum(int(b.size) * 4 for b in bs)
    io_bytes = 2 * TM * k0p * 2 + 2 * TM * nlp * 4
    vmem_limit = max(16 << 20,
                     min(int(1.25 * (w_bytes + b_bytes + io_bytes)) + (2 << 20),
                         100 << 20))
    # TODO(synk): if the resident bf16 weight stack exceeds ~40 MiB (v7x has only
    #             64 MiB VMEM/TC), stream per-layer weights instead of keeping
    #             them resident (memory_space=pl.ANY + make_async_copy / emit_pipeline).

    kernel = functools.partial(_mlp_kernel, num_layers=num_layers,
                               final_act=activation, out_dim=n_out)
    flat_params = []
    for w, b in zip(ws, bs):
        flat_params += [w, b]

    def build_and_call(single_buffer_params):
        def const_spec(shape):
            # Weights/biases: constant index_map (fetched once). Buffered(1)
            # drops the pointless second buffer; fall back to default otherwise.
            if single_buffer_params:
                return pl.BlockSpec(shape, lambda i: (0, 0),
                                    pipeline_mode=pl.Buffered(1))
            return pl.BlockSpec(shape, lambda i: (0, 0))

        in_specs = [pl.BlockSpec((TM, k0p), lambda i: (i, 0))]   # activations, tiled over M
        for w, b in zip(ws, bs):
            in_specs.append(const_spec(w.shape))
            in_specs.append(const_spec(b.shape))

        return pl.pallas_call(
            kernel,
            out_shape=jax.ShapeDtypeStruct((M_pad, nlp), jnp.float32),
            grid_spec=pltpu.PrefetchScalarGridSpec(
                num_scalar_prefetch=0,
                grid=(M_pad // TM,),
                in_specs=in_specs,
                out_specs=pl.BlockSpec((TM, nlp), lambda i: (i, 0)),  # lane-dense stores
            ),
            compiler_params=pltpu.CompilerParams(
                dimension_semantics=("parallel",),
                vmem_limit_bytes=vmem_limit,
            ),
        )(xp, *flat_params)

    try:
        out = jax.block_until_ready(build_and_call(True))
    except Exception:
        # pipeline_mode=pl.Buffered(1) unsupported on this jax/libtpu: use defaults.
        out = jax.block_until_ready(build_and_call(False))
    return out[:M, :n_out]


if __name__ == "__main__":
    # Small shapes consistent with the module, e.g. layers=[(32, 64), (64, 48), (48, 16)]
    layer_sizes = [(32, 64), (64, 48), (48, 16)]
    batch = 8

    key = jax.random.PRNGKey(0)
    key, kx = jax.random.split(key)
    x = jax.random.normal(kx, (batch, layer_sizes[0][0]), jnp.float32)

    params = init_mlp_params(layer_sizes, jax.random.PRNGKey(777))

    out = mlp_forward(x, params, activation="sigmoid")
    out = jax.block_until_ready(out)
    assert out.shape == (batch, layer_sizes[-1][1])

    # Reference 1: same bf16-matmul math in plain JAX (tight check on kernel plumbing).
    ref_bf16 = x
    for i, (w, b) in enumerate(params):
        ref_bf16 = jnp.dot(ref_bf16.astype(jnp.bfloat16), w.astype(jnp.bfloat16),
                           preferred_element_type=jnp.float32) + b
        if i != len(params) - 1:
            ref_bf16 = jnp.maximum(ref_bf16, 0.0)
    ref_bf16 = jax.nn.sigmoid(ref_bf16)
    assert jnp.allclose(out, ref_bf16, atol=5e-3, rtol=5e-3), \
        float(jnp.max(jnp.abs(out - ref_bf16)))

    # Reference 2: full-f32 module semantics (looser tolerance for bf16 matmuls).
    ref_f32 = x
    for i, (w, b) in enumerate(params):
        ref_f32 = ref_f32 @ w + b
        if i != len(params) - 1:
            ref_f32 = jnp.maximum(ref_f32, 0.0)
    ref_f32 = jax.nn.sigmoid(ref_f32)
    assert jnp.allclose(out, ref_f32, atol=3e-2, rtol=3e-2)

    print("KERNEL_OK")
</pallas_src>

<mosaic_0001>
module attributes {stable_mosaic.version = 11 : i64} {
  func.func @_mlp_kernel(%arg0: i32, %arg1: memref<16x128xbf16, #tpu.memory_space<vmem>>, %arg2: memref<128x128xbf16, #tpu.memory_space<vmem>>, %arg3: memref<1x128xf32, #tpu.memory_space<vmem>>, %arg4: memref<128x128xbf16, #tpu.memory_space<vmem>>, %arg5: memref<1x128xf32, #tpu.memory_space<vmem>>, %arg6: memref<128x128xbf16, #tpu.memory_space<vmem>>, %arg7: memref<1x128xf32, #tpu.memory_space<vmem>>, %arg8: memref<16x128xf32, #tpu.memory_space<vmem>>) attributes {dimension_semantics = [#tpu.dimension_semantics<parallel>], iteration_bounds = array<i64: 1>, scalar_prefetch = 0 : i64, scratch_operands = 0 : i64, tpu.core_type = #tpu.core_type<tc>, window_params = [{transform_indices = @transform_0, window_bounds = array<i64: 16, 128>}, {pipeline_mode = #tpu.pipeline_mode<synchronous>, transform_indices = @transform_1, window_bounds = array<i64: 128, 128>}, {pipeline_mode = #tpu.pipeline_mode<synchronous>, transform_indices = @transform_2, window_bounds = array<i64: 1, 128>}, {pipeline_mode = #tpu.pipeline_mode<synchronous>, transform_indices = @transform_3, window_bounds = array<i64: 128, 128>}, {pipeline_mode = #tpu.pipeline_mode<synchronous>, transform_indices = @transform_4, window_bounds = array<i64: 1, 128>}, {pipeline_mode = #tpu.pipeline_mode<synchronous>, transform_indices = @transform_5, window_bounds = array<i64: 128, 128>}, {pipeline_mode = #tpu.pipeline_mode<synchronous>, transform_indices = @transform_6, window_bounds = array<i64: 1, 128>}, {transform_indices = @transform_7, window_bounds = array<i64: 16, 128>}]} {
    %c0 = arith.constant 0 : index
    %c0_0 = arith.constant 0 : index
    %0 = vector.load %arg1[%c0, %c0_0] : memref<16x128xbf16, #tpu.memory_space<vmem>>, vector<16x128xbf16>
    %c0_1 = arith.constant 0 : index
    %c0_2 = arith.constant 0 : index
    %1 = vector.load %arg2[%c0_1, %c0_2] : memref<128x128xbf16, #tpu.memory_space<vmem>>, vector<128x128xbf16>
    %cst = arith.constant dense<0.000000e+00> : vector<16x128xf32>
    %2 = tpu.matmul %0, %1, %cst {dimension_numbers = #tpu.dot_dimension_numbers<[1], [0], [0], [1], [0, 0, 1, 1], [], []>} : vector<16x128xbf16>, vector<128x128xbf16>, vector<16x128xf32> -> vector<16x128xf32>
    %c0_3 = arith.constant 0 : index
    %c0_4 = arith.constant 0 : index
    %3 = vector.load %arg3[%c0_3, %c0_4] : memref<1x128xf32, #tpu.memory_space<vmem>>, vector<1x128xf32>
    %4 = vector.broadcast %3 : vector<1x128xf32> to vector<16x128xf32>
    %5 = arith.addf %2, %4 : vector<16x128xf32>
    %cst_5 = arith.constant 0.000000e+00 : f32
    %6 = vector.broadcast %cst_5 : f32 to vector<16x128xf32>
    %7 = arith.maximumf %5, %6 : vector<16x128xf32>
    %8 = arith.truncf %7 : vector<16x128xf32> to vector<16x128xbf16>
    %c0_6 = arith.constant 0 : index
    %c0_7 = arith.constant 0 : index
    %9 = vector.load %arg4[%c0_6, %c0_7] : memref<128x128xbf16, #tpu.memory_space<vmem>>, vector<128x128xbf16>
    %cst_8 = arith.constant dense<0.000000e+00> : vector<16x128xf32>
    %10 = tpu.matmul %8, %9, %cst_8 {dimension_numbers = #tpu.dot_dimension_numbers<[1], [0], [0], [1], [0, 0, 1, 1], [], []>} : vector<16x128xbf16>, vector<128x128xbf16>, vector<16x128xf32> -> vector<16x128xf32>
    %c0_9 = arith.constant 0 : index
    %c0_10 = arith.constant 0 : index
    %11 = vector.load %arg5[%c0_9, %c0_10] : memref<1x128xf32, #tpu.memory_space<vmem>>, vector<1x128xf32>
    %12 = vector.broadcast %11 : vector<1x128xf32> to vector<16x128xf32>
    %13 = arith.addf %10, %12 : vector<16x128xf32>
    %cst_11 = arith.constant 0.000000e+00 : f32
    %14 = vector.broadcast %cst_11 : f32 to vector<16x128xf32>
    %15 = arith.maximumf %13, %14 : vector<16x128xf32>
    %16 = arith.truncf %15 : vector<16x128xf32> to vector<16x128xbf16>
    %c0_12 = arith.constant 0 : index
    %c0_13 = arith.constant 0 : index
    %17 = vector.load %arg6[%c0_12, %c0_13] : memref<128x128xbf16, #tpu.memory_space<vmem>>, vector<128x128xbf16>
    %cst_14 = arith.constant dense<0.000000e+00> : vector<16x128xf32>
    %18 = tpu.matmul %16, %17, %cst_14 {dimension_numbers = #tpu.dot_dimension_numbers<[1], [0], [0], [1], [0, 0, 1, 1], [], []>} : vector<16x128xbf16>, vector<128x128xbf16>, vector<16x128xf32> -> vector<16x128xf32>
    %c0_15 = arith.constant 0 : index
    %c0_16 = arith.constant 0 : index
    %19 = vector.load %arg7[%c0_15, %c0_16] : memref<1x128xf32, #tpu.memory_space<vmem>>, vector<1x128xf32>
    %20 = vector.broadcast %19 : vector<1x128xf32> to vector<16x128xf32>
    %21 = arith.addf %18, %20 : vector<16x128xf32>
    %22 = math.absf %21 : vector<16x128xf32>
    %cst_17 = arith.constant 0.000000e+00 : f32
    %23 = vector.broadcast %cst_17 : f32 to vector<16x128xf32>
    %24 = arith.subf %23, %22 : vector<16x128xf32>
    %25 = math.exp %24 : vector<16x128xf32>
    %cst_18 = arith.constant 1.000000e+00 : f32
    %26 = vector.broadcast %cst_18 : f32 to vector<16x128xf32>
    %27 = arith.addf %26, %25 : vector<16x128xf32>
    %28 = tpu.reciprocal %27 {approx = true} : vector<16x128xf32> -> vector<16x128xf32>
    %cst_19 = arith.constant 0.000000e+00 : f32
    %29 = vector.broadcast %cst_19 : f32 to vector<16x128xf32>
    %30 = arith.cmpf oge, %21, %29 : vector<16x128xf32>
    %cst_20 = arith.constant 1.000000e+00 : f32
    %31 = vector.broadcast %cst_20 : f32 to vector<16x128xf32>
    %32 = arith.subf %31, %28 : vector<16x128xf32>
    %33 = arith.select %30, %28, %32 : vector<16x128xi1>, vector<16x128xf32>
    %c0_21 = arith.constant 0 : index
    %c0_22 = arith.constant 0 : index
    %34 = vector.load %arg8[%c0_21, %c0_22] : memref<16x128xf32, #tpu.memory_space<vmem>>, vector<16x128xf32>
    tpu.vector_store %arg8[%c0_21, %c0_22], %33 {strides = array<i32>} : memref<16x128xf32, #tpu.memory_space<vmem>>, vector<16x128xf32>,
    return
  }
  func.func @transform_0(%arg0: i32) -> (i32, i32) {
    %c0_i32 = arith.constant 0 : i32
    %c0_i32_0 = arith.constant 0 : i32
    return %arg0, %c0_i32 : i32, i32
  }
  func.func @transform_1(%arg0: i32) -> (i32, i32) {
    %c0_i32 = arith.constant 0 : i32
    %c0_i32_0 = arith.constant 0 : i32
    %c0_i32_1 = arith.constant 0 : i32
    return %c0_i32, %c0_i32_0 : i32, i32
  }
  func.func @transform_2(%arg0: i32) -> (i32, i32) {
    %c0_i32 = arith.constant 0 : i32
    %c0_i32_0 = arith.constant 0 : i32
    %c0_i32_1 = arith.constant 0 : i32
    return %c0_i32, %c0_i32_0 : i32, i32
  }
  func.func @transform_3(%arg0: i32) -> (i32, i32) {
    %c0_i32 = arith.constant 0 : i32
    %c0_i32_0 = arith.constant 0 : i32
    %c0_i32_1 = arith.constant 0 : i32
    return %c0_i32, %c0_i32_0 : i32, i32
  }
  func.func @transform_4(%arg0: i32) -> (i32, i32) {
    %c0_i32 = arith.constant 0 : i32
    %c0_i32_0 = arith.constant 0 : i32
    %c0_i32_1 = arith.constant 0 : i32
    return %c0_i32, %c0_i32_0 : i32, i32
  }
  func.func @transform_5(%arg0: i32) -> (i32, i32) {
    %c0_i32 = arith.constant 0 : i32
    %c0_i32_0 = arith.constant 0 : i32
    %c0_i32_1 = arith.constant 0 : i32
    return %c0_i32, %c0_i32_0 : i32, i32
  }
  func.func @transform_6(%arg0: i32) -> (i32, i32) {
    %c0_i32 = arith.constant 0 : i32
    %c0_i32_0 = arith.constant 0 : i32
    %c0_i32_1 = arith.constant 0 : i32
    return %c0_i32, %c0_i32_0 : i32, i32
  }
  func.func @transform_7(%arg0: i32) -> (i32, i32) {
    %c0_i32 = arith.constant 0 : i32
    %c0_i32_0 = arith.constant 0 : i32
    return %arg0, %c0_i32 : i32, i32
  }
}

module attributes {stable_mosaic.version = 11 : i64} {
  func.func @_mlp_kernel(%arg0: i32, %arg1: memref<16x128xbf16, #tpu.memory_space<vmem>>, %arg2: memref<128x128xbf16, #tpu.memory_space<vmem>>, %arg3: memref<1x128xf32, #tpu.memory_space<vmem>>, %arg4: memref<128x128xbf16, #tpu.memory_space<vmem>>, %arg5: memref<1x128xf32, #tpu.memory_space<vmem>>, %arg6: memref<128x128xbf16, #tpu.memory_space<vmem>>, %arg7: memref<1x128xf32, #tpu.memory_space<vmem>>, %arg8: memref<16x128xf32, #tpu.memory_space<vmem>>) attributes {dimension_semantics = [#tpu.dimension_semantics<parallel>], iteration_bounds = array<i64: 1>, scalar_prefetch = 0 : i64, scratch_operands = 0 : i64, tpu.core_type = #tpu.core_type<tc>, window_params = [{transform_indices = @transform_0, window_bounds = array<i64: 16, 128>}, {pipeline_mode = #tpu.pipeline_mode<synchronous>, transform_indices = @transform_1, window_bounds = array<i64: 128, 128>}, {pipeline_mode = #tpu.pipeline_mode<synchronous>, transform_indices = @transform_2, window_bounds = array<i64: 1, 128>}, {pipeline_mode = #tpu.pipeline_mode<synchronous>, transform_indices = @transform_3, window_bounds = array<i64: 128, 128>}, {pipeline_mode = #tpu.pipeline_mode<synchronous>, transform_indices = @transform_4, window_bounds = array<i64: 1, 128>}, {pipeline_mode = #tpu.pipeline_mode<synchronous>, transform_indices = @transform_5, window_bounds = array<i64: 128, 128>}, {pipeline_mode = #tpu.pipeline_mode<synchronous>, transform_indices = @transform_6, window_bounds = array<i64: 1, 128>}, {transform_indices = @transform_7, window_bounds = array<i64: 16, 128>}]} {
    %c0 = arith.constant 0 : index
    %c0_0 = arith.constant 0 : index
    %0 = vector.load %arg1[%c0, %c0_0] : memref<16x128xbf16, #tpu.memory_space<vmem>>, vector<16x128xbf16>
    %c0_1 = arith.constant 0 : index
    %c0_2 = arith.constant 0 : index
    %1 = vector.load %arg2[%c0_1, %c0_2] : memref<128x128xbf16, #tpu.memory_space<vmem>>, vector<128x128xbf16>
    %cst = arith.constant dense<0.000000e+00> : vector<16x128xf32>
    %2 = tpu.matmul %0, %1, %cst {dimension_numbers = #tpu.dot_dimension_numbers<[1], [0], [0], [1], [0, 0, 1, 1], [], []>} : vector<16x128xbf16>, vector<128x128xbf16>, vector<16x128xf32> -> vector<16x128xf32>
    %c0_3 = arith.constant 0 : index
    %c0_4 = arith.constant 0 : index
    %3 = vector.load %arg3[%c0_3, %c0_4] : memref<1x128xf32, #tpu.memory_space<vmem>>, vector<1x128xf32>
    %4 = vector.broadcast %3 : vector<1x128xf32> to vector<16x128xf32>
    %5 = arith.addf %2, %4 : vector<16x128xf32>
    %cst_5 = arith.constant 0.000000e+00 : f32
    %6 = vector.broadcast %cst_5 : f32 to vector<16x128xf32>
    %7 = arith.maximumf %5, %6 : vector<16x128xf32>
    %8 = arith.truncf %7 : vector<16x128xf32> to vector<16x128xbf16>
    %c0_6 = arith.constant 0 : index
    %c0_7 = arith.constant 0 : index
    %9 = vector.load %arg4[%c0_6, %c0_7] : memref<128x128xbf16, #tpu.memory_space<vmem>>, vector<128x128xbf16>
    %cst_8 = arith.constant dense<0.000000e+00> : vector<16x128xf32>
    %10 = tpu.matmul %8, %9, %cst_8 {dimension_numbers = #tpu.dot_dimension_numbers<[1], [0], [0], [1], [0, 0, 1, 1], [], []>} : vector<16x128xbf16>, vector<128x128xbf16>, vector<16x128xf32> -> vector<16x128xf32>
    %c0_9 = arith.constant 0 : index
    %c0_10 = arith.constant 0 : index
    %11 = vector.load %arg5[%c0_9, %c0_10] : memref<1x128xf32, #tpu.memory_space<vmem>>, vector<1x128xf32>
    %12 = vector.broadcast %11 : vector<1x128xf32> to vector<16x128xf32>
    %13 = arith.addf %10, %12 : vector<16x128xf32>
    %cst_11 = arith.constant 0.000000e+00 : f32
    %14 = vector.broadcast %cst_11 : f32 to vector<16x128xf32>
    %15 = arith.maximumf %13, %14 : vector<16x128xf32>
    %16 = arith.truncf %15 : vector<16x128xf32> to vector<16x128xbf16>
    %c0_12 = arith.constant 0 : index
    %c0_13 = arith.constant 0 : index
    %17 = vector.load %arg6[%c0_12, %c0_13] : memref<128x128xbf16, #tpu.memory_space<vmem>>, vector<128x128xbf16>
    %cst_14 = arith.constant dense<0.000000e+00> : vector<16x128xf32>
    %18 = tpu.matmul %16, %17, %cst_14 {dimension_numbers = #tpu.dot_dimension_numbers<[1], [0], [0], [1], [0, 0, 1, 1], [], []>} : vector<16x128xbf16>, vector<128x128xbf16>, vector<16x128xf32> -> vector<16x128xf32>
    %c0_15 = arith.constant 0 : index
    %c0_16 = arith.constant 0 : index
    %19 = vector.load %arg7[%c0_15, %c0_16] : memref<1x128xf32, #tpu.memory_space<vmem>>, vector<1x128xf32>
    %20 = vector.broadcast %19 : vector<1x128xf32> to vector<16x128xf32>
    %21 = arith.addf %18, %20 : vector<16x128xf32>
    %22 = math.absf %21 : vector<16x128xf32>
    %cst_17 = arith.constant 0.000000e+00 : f32
    %23 = vector.broadcast %cst_17 : f32 to vector<16x128xf32>
    %24 = arith.subf %23, %22 : vector<16x128xf32>
    %25 = math.exp %24 : vector<16x128xf32>
    %cst_18 = arith.constant 1.000000e+00 : f32
    %26 = vector.broadcast %cst_18 : f32 to vector<16x128xf32>
    %27 = arith.addf %26, %25 : vector<16x128xf32>
    %28 = tpu.reciprocal %27 {approx = true} : vector<16x128xf32> -> vector<16x128xf32>
    %cst_19 = arith.constant 0.000000e+00 : f32
    %29 = vector.broadcast %cst_19 : f32 to vector<16x128xf32>
    %30 = arith.cmpf oge, %21, %29 : vector<16x128xf32>
    %cst_20 = arith.constant 1.000000e+00 : f32
    %31 = vector.broadcast %cst_20 : f32 to vector<16x128xf32>
    %32 = arith.subf %31, %28 : vector<16x128xf32>
    %33 = arith.select %30, %28, %32 : vector<16x128xi1>, vector<16x128xf32>
    %c0_21 = arith.constant 0 : index
    %c0_22 = arith.constant 0 : index
    %34 = vector.load %arg8[%c0_21, %c0_22] : memref<16x128xf32, #tpu.memory_space<vmem>>, vector<16x128xf32>
    tpu.vector_store %arg8[%c0_21, %c0_22], %33 {strides = array<i32>} : memref<16x128xf32, #tpu.memory_space<vmem>>, vector<16x128xf32>,
    return
  }
  func.func @transform_0(%arg0: i32) -> (i32, i32) {
    %c0_i32 = arith.constant 0 : i32
    %c0_i32_0 = arith.constant 0 : i32
    return %arg0, %c0_i32 : i32, i32
  }
  func.func @transform_1(%arg0: i32) -> (i32, i32) {
    %c0_i32 = arith.constant 0 : i32
    %c0_i32_0 = arith.constant 0 : i32
    %c0_i32_1 = arith.constant 0 : i32
    return %c0_i32, %c0_i32_0 : i32, i32
  }
  func.func @transform_2(%arg0: i32) -> (i32, i32) {
    %c0_i32 = arith.constant 0 : i32
    %c0_i32_0 = arith.constant 0 : i32
    %c0_i32_1 = arith.constant 0 : i32
    return %c0_i32, %c0_i32_0 : i32, i32
  }
  func.func @transform_3(%arg0: i32) -> (i32, i32) {
    %c0_i32 = arith.constant 0 : i32
    %c0_i32_0 = arith.constant 0 : i32
    %c0_i32_1 = arith.constant 0 : i32
    return %c0_i32, %c0_i32_0 : i32, i32
  }
  func.func @transform_4(%arg0: i32) -> (i32, i32) {
    %c0_i32 = arith.constant 0 : i32
    %c0_i32_0 = arith.constant 0 : i32
    %c0_i32_1 = arith.constant 0 : i32
    return %c0_i32, %c0_i32_0 : i32, i32
  }
  func.func @transform_5(%arg0: i32) -> (i32, i32) {
    %c0_i32 = arith.constant 0 : i32
    %c0_i32_0 = arith.constant 0 : i32
    %c0_i32_1 = arith.constant 0 : i32
    return %c0_i32, %c0_i32_0 : i32, i32
  }
  func.func @transform_6(%arg0: i32) -> (i32, i32) {
    %c0_i32 = arith.constant 0 : i32
    %c0_i32_0 = arith.constant 0 : i32
    %c0_i32_1 = arith.constant 0 : i32
    return %c0_i32, %c0_i32_0 : i32, i32
  }
  func.func @transform_7(%arg0: i32) -> (i32, i32) {
    %c0_i32 = arith.constant 0 : i32
    %c0_i32_0 = arith.constant 0 : i32
    return %arg0, %c0_i32 : i32, i32
  }
}

</mosaic_0001>

<bundles_post_ra>
// kernel: tpu_custom_call.1
= control target key start
LH: loop header
LB: loop body
LE: loop exit
PB: predicated region body
PF: predicated region fallthrough
CT: control target
= control target key end

     0   :  { %12 = vsyncpa [#allocation3], 0  ;;  %s925_s0 = inlined_call_operand.hbm [shape: bf16[16,128], index: 0, kind: input, shape index: {}]   ;;  %s926_s1 = inlined_call_operand.hbm [shape: bf16[128,128], index: 1, kind: input, shape index: {}]   ;;  %s927_s2 = inlined_call_operand.vmem [shape: f32[1,128], index: 2, kind: input, shape index: {}]   ;;  %s928_s3 = inlined_call_operand.hbm [shape: bf16[128,128], index: 3, kind: input, shape index: {}]   ;;  %s929_s4 = inlined_call_operand.vmem [shape: f32[1,128], index: 4, kind: input, shape index: {}]   ;;  %s930_s5 = inlined_call_operand.hbm [shape: bf16[128,128], index: 5, kind: input, shape index: {}]   ;;  %s931_s6 = inlined_call_operand.vmem [shape: f32[1,128], index: 6, kind: input, shape index: {}]   ;;  %s932_s7 = inlined_call_operand.hbm [shape: f32[16,128], index: 7, kind: output, shape index: {}]  }
   0x1   :  { %13 = vsyncpa [#allocation6], 0 }
   0x2   :  { %14 = vsyncpa [#allocation9], 0 }
   0x3   :  { %15 = vsyncpa [#allocation4], 0  ;;  %s749_s24 = smov [#allocation5]   ;;  %s750_s26 = smov [#allocation2]  }
   0x4   :  { %s33_s25 = sshll.u32 %s749_s24, 4  ;;  %s21_s27 = sshll.u32 %s750_s26, 4  ;;  %s34_s25 = int_to_ptr.vmem [resolvable:$true] %s33_s25  ;;  %s800_s27 = int_to_ptr.vmem [resolvable:$true] %s21_s27 }
   0x5   :  { %s631_s30 = scalar_lea.hbm %s926_s1, 1024 }
   0x6   :  { %p632_p0 = scmp.ne.s32.totalorder %s926_s1, %s631_s30  ;;  %p635_p1 = scmp.lt.u32.totalorder %s631_s30, %s926_s1 }
   0x8   :  { %p637_p2 = pnand %p635_p1, %p632_p0 }
   0xa   :  { %640 = shalt.err (!%p637_p2)
}
   0xb   :  { %s641_s12 = scalar_lea.vmem %s34_s25, 1024  ;;  %p646_p4 = scmp.lt.s32.totalorder %s34_s25, %s34_s25 }
   0xc   :  { %p642_p3 = scmp.ne.s32.totalorder %s34_s25, %s641_s12  ;;  %p647_p5 = scmp.lt.s32.totalorder %s641_s12, %s641_s12 }
   0xe   :  { %p648_p6 = por %p647_p5, %p646_p4 }
  0x10   :  { %p649_p7 = pnand %p648_p6, %p642_p3 }
  0x12   :  { %652 = shalt.err (!%p649_p7)
}
  0x13   :  { %s751_s13 = smov 64   ;;  %s752_s14 = smov 4  }
  0x14   :  { %39 = dma.hbm_to_vmem [thread:$0]  %s926_s1, 1024, %s34_s25, [#allocation6], %s751_s13, %s751_s13, %s752_s14  }
  0x15   :  { %s653_s19 = scalar_lea.hbm %s925_s0, 128 }
  0x16   :  { %p654_p8 = scmp.ne.s32.totalorder %s925_s0, %s653_s19  ;;  %p657_p9 = scmp.lt.u32.totalorder %s653_s19, %s925_s0 }
  0x18   :  { %p659_p10 = pnand %p657_p9, %p654_p8 }
  0x1a   :  { %662 = shalt.err (!%p659_p10)
}
  0x1b   :  { %s663_s24 = scalar_lea.vmem %s800_s27, 128  ;;  %p668_p12 = scmp.lt.s32.totalorder %s800_s27, %s800_s27 }
  0x1c   :  { %p664_p11 = scmp.ne.s32.totalorder %s800_s27, %s663_s24  ;;  %p669_p13 = scmp.lt.s32.totalorder %s663_s24, %s663_s24 }
  0x1e   :  { %p670_p0 = por %p669_p13, %p668_p12 }
  0x20   :  { %p671_p1 = pnand %p670_p0, %p664_p11 }
  0x22   :  { %674 = shalt.err (!%p671_p1)
}
  0x23   :  { %27 = dma.hbm_to_vmem [thread:$0]  %s925_s0, 128, %s800_s27, [#allocation3], %s751_s13, %s751_s13, %s752_s14  }
  0x24   :  { %s753_s26 = smov [#allocation7]   ;;  %s754_s29 = smov [#allocation8]  }
  0x25   :  { %s47_s28 = sshll.u32 %s753_s26, 4  ;;  %s61_s30 = sshll.u32 %s754_s29, 4  ;;  %s48_s28 = int_to_ptr.vmem [resolvable:$true] %s47_s28  ;;  %s837_s30 = int_to_ptr.vmem [resolvable:$true] %s61_s30 }
  0x26   :  { %s675_s10 = scalar_lea.hbm %s928_s3, 1024 }
  0x27   :  { %p676_p2 = scmp.ne.s32.totalorder %s928_s3, %s675_s10  ;;  %p679_p3 = scmp.lt.u32.totalorder %s675_s10, %s928_s3 }
  0x29   :  { %p681_p4 = pnand %p679_p3, %p676_p2 }
  0x2b   :  { %684 = shalt.err (!%p681_p4)
}
  0x2c   :  { %s685_s0 = scalar_lea.vmem %s48_s28, 1024  ;;  %p690_p6 = scmp.lt.s32.totalorder %s48_s28, %s48_s28 }
  0x2d   :  { %p686_p5 = scmp.ne.s32.totalorder %s48_s28, %s685_s0  ;;  %p691_p7 = scmp.lt.s32.totalorder %s685_s0, %s685_s0 }
  0x2f   :  { %p692_p8 = por %p691_p7, %p690_p6 }
  0x31   :  { %p693_p9 = pnand %p692_p8, %p686_p5 }
  0x33   :  { %696 = shalt.err (!%p693_p9)
}
  0x34   :  { %53 = dma.hbm_to_vmem [thread:$0]  %s928_s3, 1024, %s48_s28, [#allocation6], %s751_s13, %s751_s13, %s752_s14  }
  0x35   :  { %s697_s20 = scalar_lea.hbm %s930_s5, 1024 }
  0x36   :  { %p698_p10 = scmp.ne.s32.totalorder %s930_s5, %s697_s20  ;;  %p701_p11 = scmp.lt.u32.totalorder %s697_s20, %s930_s5 }
  0x38   :  { %p703_p12 = pnand %p701_p11, %p698_p10 }
  0x3a   :  { %706 = shalt.err (!%p703_p12)
}
  0x3b   :  { %s707_s1 = scalar_lea.vmem %s837_s30, 1024  ;;  %p712_p0 = scmp.lt.s32.totalorder %s837_s30, %s837_s30 }
  0x3c   :  { %p708_p13 = scmp.ne.s32.totalorder %s837_s30, %s707_s1  ;;  %p713_p1 = scmp.lt.s32.totalorder %s707_s1, %s707_s1 }
  0x3e   :  { %p714_p2 = por %p713_p1, %p712_p0 }
  0x40   :  { %p715_p3 = pnand %p714_p2, %p708_p13 }
  0x42   :  { %718 = shalt.err (!%p715_p3)
}
  0x43   :  { %67 = dma.hbm_to_vmem [thread:$0]  %s930_s5, 1024, %s837_s30, [#allocation9], %s751_s13, %s751_s13, %s752_s14  }
  0x44   :  { %741 = dma.done.wait [#allocation3], 128  }
  0x45   :  { %742 = vsyncadd [#allocation3], 4294967168 }
  0x46   :  { %743 = dma.done.wait [#allocation6], 2048  }
  0x47   :  { %744 = vsyncadd [#allocation6], 4294965248 }
  0x48   :  { %745 = dma.done.wait [#allocation9], 1024  }
  0x49   :  { %746 = vsyncadd [#allocation9], 4294966272  ;;  %v755_v0 = vmov 0.0   ;;  %vm756_vm0 = vmmov 0   ;;  %v598_v1 = vld [vmem:[#allocation5] sm:$0xff]   ;;  %v599_v2 = vld [vmem:[#allocation5 + $0x8] sm:$0xff]  }
  0x4a   :  { %527 = vmatprep.subr.bf16.mxu0 %v755_v0  ;;  %543 = vmatprep.mubr.msk.bf16.mxu0 %vm756_vm0, %v755_v0  ;;  %v600_v3 = vld [vmem:[#allocation5 + $0x10] sm:$0xff]   ;;  %v607_v4 = vld [vmem:[#allocation7] sm:$0xff]   ;;  %v601_v5 = vld [vmem:[#allocation5 + $0x18] sm:$0xff]  }
  0x4b   :  { %547 = vmatprep.subr.bf16.mxu1 %v755_v0  ;;  %563 = vmatprep.mubr.msk.bf16.mxu1 %vm756_vm0, %v755_v0  ;;  %v608_v6 = vld [vmem:[#allocation7 + $0x8] sm:$0xff]   ;;  %v602_v7 = vld [vmem:[#allocation5 + $0x20] sm:$0xff]   ;;  %v609_v8 = vld [vmem:[#allocation7 + $0x10] sm:$0xff]  }
  0x4c   :  { %528 = vmatpush3.bf16.msra.mxu0 %v598_v1  ;;  %548 = vmatpush3.bf16.msra.mxu1 %v607_v4  ;;  %v603_v9 = vld [vmem:[#allocation5 + $0x28] sm:$0xff]   ;;  %v610_v10 = vld [vmem:[#allocation7 + $0x18] sm:$0xff]   ;;  %v604_v11 = vld [vmem:[#allocation5 + $0x30] sm:$0xff]  }
  0x4d   :  { %529 = vmatprep.subr.bf16.mxu0 %v755_v0  ;;  %549 = vmatprep.subr.bf16.mxu1 %v755_v0  ;;  %v611_v12 = vld [vmem:[#allocation7 + $0x20] sm:$0xff]   ;;  %v605_v13 = vld [vmem:[#allocation5 + $0x38] sm:$0xff]   ;;  %v612_v14 = vld [vmem:[#allocation7 + $0x28] sm:$0xff]  }
  0x4e   :  { %v606_v15 = vld [vmem:[#allocation2] sm:$0xff]   ;;  %v613_v16 = vld [vmem:[#allocation7 + $0x30] sm:$0xff]   ;;  %v615_v18 = vld [vmem:[#allocation8] sm:$0xff]  }
  0x4f   :  { %v614_v17 = vld [vmem:[#allocation7 + $0x38] sm:$0xff]   ;;  %v616_v19 = vld [vmem:[#allocation8 + $0x8] sm:$0xff]   ;;  %v617_v20 = vld [vmem:[#allocation8 + $0x10] sm:$0xff]  }
  0x50   :  { %530 = vmatpush3.bf16.msra.mxu0 %v599_v2  ;;  %550 = vmatpush3.bf16.msra.mxu1 %v608_v6  ;;  %v618_v21 = vld [vmem:[#allocation8 + $0x18] sm:$0xff]   ;;  %v619_v22 = vld [vmem:[#allocation8 + $0x20] sm:$0xff]   ;;  %v620_v23 = vld [vmem:[#allocation8 + $0x28] sm:$0xff]  }
  0x51   :  { %531 = vmatprep.subr.bf16.mxu0 %v755_v0  ;;  %551 = vmatprep.subr.bf16.mxu1 %v755_v0  ;;  %v472_v24 = vld [vmem:[%s927_s2] ss:$0 sm:$0xff]  ;;  %v621_v34 = vld [vmem:[#allocation8 + $0x30] sm:$0xff]  }
  0x52   :  { %v622_v35 = vld [vmem:[#allocation8 + $0x38] sm:$0xff]  }
  0x53   :  { %v482_v36 = vld [vmem:[%s929_s4] ss:$0 sm:$0xff]  ;;  %s757_s4 = smov [#allocation10]  }
  0x54   :  { %532 = vmatpush3.bf16.msra.mxu0 %v600_v3  ;;  %552 = vmatpush3.bf16.msra.mxu1 %v609_v8  ;;  %v491_v46 = vld [vmem:[%s931_s6] ss:$0 sm:$0xff]  ;;  %s458_s6 = sshll.u32 %s757_s4, 4  ;;  %s459_s6 = int_to_ptr.vmem [resolvable:$true] %s458_s6 }
  0x55   :  { %533 = vmatprep.subr.bf16.mxu0 %v755_v0  ;;  %553 = vmatprep.subr.bf16.mxu1 %v755_v0  ;;  %s719_s29 = scalar_lea.vmem %s459_s6, 256  ;;  %p724_p5 = scmp.lt.s32.totalorder %s459_s6, %s459_s6 }
  0x56   :  { %p720_p4 = scmp.ne.s32.totalorder %s459_s6, %s719_s29  ;;  %p725_p6 = scmp.lt.s32.totalorder %s719_s29, %s719_s29 }
  0x58   :  { %534 = vmatpush3.bf16.msra.mxu0 %v601_v5  ;;  %554 = vmatpush3.bf16.msra.mxu1 %v610_v10  ;;  %p726_p7 = por %p725_p6, %p724_p5 }
  0x59   :  { %535 = vmatprep.subr.bf16.mxu0 %v755_v0  ;;  %555 = vmatprep.subr.bf16.mxu1 %v755_v0 }
  0x5a   :  { %p727_p8 = pnand %p726_p7, %p720_p4 }
  0x5c   :  { %536 = vmatpush3.bf16.msra.mxu0 %v602_v7  ;;  %556 = vmatpush3.bf16.msra.mxu1 %v611_v12 }
  0x5d   :  { %537 = vmatprep.subr.bf16.mxu0 %v755_v0  ;;  %557 = vmatprep.subr.bf16.mxu1 %v755_v0 }
  0x60   :  { %538 = vmatpush3.bf16.msra.mxu0 %v603_v9  ;;  %558 = vmatpush3.bf16.msra.mxu1 %v612_v14 }
  0x61   :  { %539 = vmatprep.subr.bf16.mxu0 %v755_v0  ;;  %559 = vmatprep.subr.bf16.mxu1 %v755_v0 }
  0x64   :  { %540 = vmatpush3.bf16.msra.mxu0 %v604_v11  ;;  %560 = vmatpush3.bf16.msra.mxu1 %v613_v16 }
  0x65   :  { %541 = vmatprep.subr.bf16.mxu0 %v755_v0  ;;  %561 = vmatprep.subr.bf16.mxu1 %v755_v0 }
  0x68   :  { %542 = vmatpush3.bf16.msra.mxu0 %v605_v13  ;;  %562 = vmatpush3.bf16.msra.mxu1 %v614_v17 }
  0x69   :  { %567 = vmatprep.subr.bf16.mxu0 %v755_v0 }
  0x6b   :  { %544 = vmatmul.mubr.bf16.vlgmr.msra.gmra.mrb[0].mxu0 %v606_v15 }
  0x6c   :  { %583 = vmatprep.mubr.msk.bf16.mxu0 %vm756_vm0, %v755_v0  ;;  %568 = vmatpush3.bf16.msra.mxu0 %v615_v18 }
  0x6d   :  { %569 = vmatprep.subr.bf16.mxu0 %v755_v0 }
  0x70   :  { %570 = vmatpush3.bf16.msra.mxu0 %v616_v19 }
  0x71   :  { %571 = vmatprep.subr.bf16.mxu0 %v755_v0 }
  0x74   :  { %572 = vmatpush3.bf16.msra.mxu0 %v617_v20 }
  0x75   :  { %573 = vmatprep.subr.bf16.mxu0 %v755_v0 }
  0x78   :  { %574 = vmatpush3.bf16.msra.mxu0 %v618_v21 }
  0x79   :  { %575 = vmatprep.subr.bf16.mxu0 %v755_v0 }
  0x7c   :  { %576 = vmatpush3.bf16.msra.mxu0 %v619_v22 }
  0x7d   :  { %577 = vmatprep.subr.bf16.mxu0 %v755_v0 }
  0x80   :  { %578 = vmatpush3.bf16.msra.mxu0 %v620_v23 }
  0x81   :  { %579 = vmatprep.subr.bf16.mxu0 %v755_v0 }
  0x84   :  { %580 = vmatpush3.bf16.msra.mxu0 %v621_v34 }
  0x85   :  { %581 = vmatprep.subr.bf16.mxu0 %v755_v0 }
  0x88   :  { %582 = vmatpush3.bf16.msra.mxu0 %v622_v35 }
 0x13e   :  { %v196_v25 = vpop.f32.mrb[0].mxu0 }
 0x13f   :  { %v197_v26 = vadd.f32 %v472_v24, %v196_v25  ;;  %v545_v27 = vpop.f32.mrb[1].mxu0 }
 0x140   :  { %v199_v28 = vpop.f32.mrb[2].mxu0 }
 0x141   :  { %v200_v29 = vadd.f32 %v472_v24, %v199_v28  ;;  %v546_v30 = vpop.f32.mrb[3].mxu0  ;;  %v203_v31 = vmax.f32 %v197_v26, 0.0 }
 0x143   :  { %v204_v32 = vmax.f32 %v200_v29, 0.0 }
 0x145   :  { %v205_v33 = vpack.c.bf16 %v204_v32, %v203_v31 }
 0x147   :  { %564 = vmatmul.mubr.bf16.vlgmr.msra.gmra.mrb[0].mxu1 %v205_v33 }
 0x21a   :  { %v311_v37 = vpop.f32.mrb[0].mxu1 }
 0x21b   :  { %v312_v38 = vadd.f32 %v482_v36, %v311_v37  ;;  %v565_v39 = vpop.f32.mrb[1].mxu1 }
 0x21c   :  { %v314_v40 = vpop.f32.mrb[2].mxu1 }
 0x21d   :  { %v315_v41 = vadd.f32 %v482_v36, %v314_v40  ;;  %v566_v42 = vpop.f32.mrb[3].mxu1  ;;  %v318_v43 = vmax.f32 %v312_v38, 0.0 }
 0x21f   :  { %v319_v44 = vmax.f32 %v315_v41, 0.0 }
 0x221   :  { %v320_v45 = vpack.c.bf16 %v319_v44, %v318_v43 }
 0x223   :  { %584 = vmatmul.mubr.bf16.vlgmr.msra.gmra.mrb[4].mxu0 %v320_v45 }
 0x2f6   :  { %v426_v47 = vpop.f32.mrb[4].mxu0 }
 0x2f7   :  { %v427_v48 = vadd.f32 %v491_v46, %v426_v47  ;;  %v585_v49 = vpop.f32.mrb[5].mxu0 }
 0x2f8   :  { %v429_v50 = vpop.f32.mrb[6].mxu0 }
 0x2f9   :  { %v433_v51 = vand.u32 2147483647, %v427_v48  ;;  %v430_v52 = vadd.f32 %v491_v46, %v429_v50  ;;  %v586_v53 = vpop.f32.mrb[7].mxu0  ;;  %vm445_vm1 = vcmp.ge.f32.partialorder %v427_v48, 0.0 }
 0x2fb   :  { %v435_v54 = vsub.f32 0.0, %v433_v51  ;;  %v434_v55 = vand.u32 2147483647, %v430_v52  ;;  %vm446_vm2 = vcmp.ge.f32.partialorder %v430_v52, 0.0 }
 0x2fd   :  { %v437_v56 = vmul.f32 1.442695, %v435_v54  ;;  %v436_v57 = vsub.f32 0.0, %v434_v55 }
 0x2ff   :  { %623 = vpow2.f32 %v437_v56  ;;  %v439_v58 = vmul.f32 1.442695, %v436_v57 }
 0x301   :  { %625 = vpow2.f32 %v439_v58 }
 0x309   :  { %v624_v59 = vpop.eup %623 }
 0x30a   :  { %v441_v60 = vadd.f32 1.0, %v624_v59 }
 0x30b   :  { %v626_v61 = vpop.eup %625 }
 0x30c   :  { %627 = vrcp.f32 %v441_v60  ;;  %v442_v62 = vadd.f32 1.0, %v626_v61 }
 0x30e   :  { %629 = vrcp.f32 %v442_v62 }
 0x316   :  { %v628_v63 = vpop.eup %627 }
 0x317   :  { %v447_v0 = vsub.f32 1.0, %v628_v63 }
 0x318   :  { %v630_v1 = vpop.eup %629 }
 0x319   :  { %v449_v2 = vsel %vm445_vm1, %v628_v63, %v447_v0  ;;  %v448_v3 = vsub.f32 1.0, %v630_v1 }
 0x31a   :  { %451 = vst [vmem:[#allocation10] sm:$0xff] %v449_v2 }
 0x31b   :  { %v450_v4 = vsel %vm446_vm2, %v630_v1, %v448_v3 }
 0x31c   :  { %452 = vst [vmem:[#allocation10 + $0x8] sm:$0xff] %v450_v4 }
 0x31d   :  { %730 = shalt.err (!%p727_p8)
}
 0x31e   :  { %s731_s9 = scalar_lea.hbm %s932_s7, 256 }
 0x31f   :  { %p732_p9 = scmp.ne.s32.totalorder %s932_s7, %s731_s9  ;;  %p735_p10 = scmp.lt.u32.totalorder %s731_s9, %s932_s7 }
 0x321   :  { %p737_p11 = pnand %p735_p10, %p732_p9 }
 0x323   :  { %740 = shalt.err (!%p737_p11)
}
 0x324   :  { %s758_s16 = smov 128   ;;  %s759_s0 = smov 8  }
 0x325   :  { %464 = dma.vmem_to_hbm [thread:$0]  %s459_s6, 256, %s932_s7, [#allocation4], %s758_s16, %s758_s16, %s759_s0  }
 0x326   :  { %747 = dma.done.wait [#allocation4], 256  }
 0x327   :  { %748 = vsyncadd [#allocation4], 4294967040 }
 0x328   :  { %468 = vsyncpa [#allocation3], 1 }
 0x329   :  { %469 = vsyncpa [#allocation6], 1 }
 0x32a   :  { %470 = vsyncpa [#allocation9], 1 }
 0x32b   :  { %471 = vsyncpa [#allocation4], 1 }

// kernel: tpu_custom_call.1
= control target key start
LH: loop header
LB: loop body
LE: loop exit
PB: predicated region body
PF: predicated region fallthrough
CT: control target
= control target key end

     0   :  { %12 = vsyncpa [#allocation3], 0  ;;  %s925_s0 = inlined_call_operand.hbm [shape: bf16[16,128], index: 0, kind: input, shape index: {}]   ;;  %s926_s1 = inlined_call_operand.hbm [shape: bf16[128,128], index: 1, kind: input, shape index: {}]   ;;  %s927_s2 = inlined_call_operand.vmem [shape: f32[1,128], index: 2, kind: input, shape index: {}]   ;;  %s928_s3 = inlined_call_operand.hbm [shape: bf16[128,128], index: 3, kind: input, shape index: {}]   ;;  %s929_s4 = inlined_call_operand.vmem [shape: f32[1,128], index: 4, kind: input, shape index: {}]   ;;  %s930_s5 = inlined_call_operand.hbm [shape: bf16[128,128], index: 5, kind: input, shape index: {}]   ;;  %s931_s6 = inlined_call_operand.vmem [shape: f32[1,128], index: 6, kind: input, shape index: {}]   ;;  %s932_s7 = inlined_call_operand.hbm [shape: f32[16,128], index: 7, kind: output, shape index: {}]  }
   0x1   :  { %13 = vsyncpa [#allocation6], 0 }
   0x2   :  { %14 = vsyncpa [#allocation9], 0 }
   0x3   :  { %15 = vsyncpa [#allocation4], 0  ;;  %s749_s24 = smov [#allocation5]   ;;  %s750_s26 = smov [#allocation2]  }
   0x4   :  { %s33_s25 = sshll.u32 %s749_s24, 4  ;;  %s21_s27 = sshll.u32 %s750_s26, 4  ;;  %s34_s25 = int_to_ptr.vmem [resolvable:$true] %s33_s25  ;;  %s800_s27 = int_to_ptr.vmem [resolvable:$true] %s21_s27 }
   0x5   :  { %s631_s30 = scalar_lea.hbm %s926_s1, 1024 }
   0x6   :  { %p632_p0 = scmp.ne.s32.totalorder %s926_s1, %s631_s30  ;;  %p635_p1 = scmp.lt.u32.totalorder %s631_s30, %s926_s1 }
   0x8   :  { %p637_p2 = pnand %p635_p1, %p632_p0 }
   0xa   :  { %640 = shalt.err (!%p637_p2)
}
   0xb   :  { %s641_s12 = scalar_lea.vmem %s34_s25, 1024  ;;  %p646_p4 = scmp.lt.s32.totalorder %s34_s25, %s34_s25 }
   0xc   :  { %p642_p3 = scmp.ne.s32.totalorder %s34_s25, %s641_s12  ;;  %p647_p5 = scmp.lt.s32.totalorder %s641_s12, %s641_s12 }
   0xe   :  { %p648_p6 = por %p647_p5, %p646_p4 }
  0x10   :  { %p649_p7 = pnand %p648_p6, %p642_p3 }
  0x12   :  { %652 = shalt.err (!%p649_p7)
}
  0x13   :  { %s751_s13 = smov 64   ;;  %s752_s14 = smov 4  }
  0x14   :  { %39 = dma.hbm_to_vmem [thread:$0]  %s926_s1, 1024, %s34_s25, [#allocation6], %s751_s13, %s751_s13, %s752_s14  }
  0x15   :  { %s653_s19 = scalar_lea.hbm %s925_s0, 128 }
  0x16   :  { %p654_p8 = scmp.ne.s32.totalorder %s925_s0, %s653_s19  ;;  %p657_p9 = scmp.lt.u32.totalorder %s653_s19, %s925_s0 }
  0x18   :  { %p659_p10 = pnand %p657_p9, %p654_p8 }
  0x1a   :  { %662 = shalt.err (!%p659_p10)
}
  0x1b   :  { %s663_s24 = scalar_lea.vmem %s800_s27, 128  ;;  %p668_p12 = scmp.lt.s32.totalorder %s800_s27, %s800_s27 }
  0x1c   :  { %p664_p11 = scmp.ne.s32.totalorder %s800_s27, %s663_s24  ;;  %p669_p13 = scmp.lt.s32.totalorder %s663_s24, %s663_s24 }
  0x1e   :  { %p670_p0 = por %p669_p13, %p668_p12 }
  0x20   :  { %p671_p1 = pnand %p670_p0, %p664_p11 }
  0x22   :  { %674 = shalt.err (!%p671_p1)
}
  0x23   :  { %27 = dma.hbm_to_vmem [thread:$0]  %s925_s0, 128, %s800_s27, [#allocation3], %s751_s13, %s751_s13, %s752_s14  }
  0x24   :  { %s753_s26 = smov [#allocation7]   ;;  %s754_s29 = smov [#allocation8]  }
  0x25   :  { %s47_s28 = sshll.u32 %s753_s26, 4  ;;  %s61_s30 = sshll.u32 %s754_s29, 4  ;;  %s48_s28 = int_to_ptr.vmem [resolvable:$true] %s47_s28  ;;  %s837_s30 = int_to_ptr.vmem [resolvable:$true] %s61_s30 }
  0x26   :  { %s675_s10 = scalar_lea.hbm %s928_s3, 1024 }
  0x27   :  { %p676_p2 = scmp.ne.s32.totalorder %s928_s3, %s675_s10  ;;  %p679_p3 = scmp.lt.u32.totalorder %s675_s10, %s928_s3 }
  0x29   :  { %p681_p4 = pnand %p679_p3, %p676_p2 }
  0x2b   :  { %684 = shalt.err (!%p681_p4)
}
  0x2c   :  { %s685_s0 = scalar_lea.vmem %s48_s28, 1024  ;;  %p690_p6 = scmp.lt.s32.totalorder %s48_s28, %s48_s28 }
  0x2d   :  { %p686_p5 = scmp.ne.s32.totalorder %s48_s28, %s685_s0  ;;  %p691_p7 = scmp.lt.s32.totalorder %s685_s0, %s685_s0 }
  0x2f   :  { %p692_p8 = por %p691_p7, %p690_p6 }
  0x31   :  { %p693_p9 = pnand %p692_p8, %p686_p5 }
  0x33   :  { %696 = shalt.err (!%p693_p9)
}
  0x34   :  { %53 = dma.hbm_to_vmem [thread:$0]  %s928_s3, 1024, %s48_s28, [#allocation6], %s751_s13, %s751_s13, %s752_s14  }
  0x35   :  { %s697_s20 = scalar_lea.hbm %s930_s5, 1024 }
  0x36   :  { %p698_p10 = scmp.ne.s32.totalorder %s930_s5, %s697_s20  ;;  %p701_p11 = scmp.lt.u32.totalorder %s697_s20, %s930_s5 }
  0x38   :  { %p703_p12 = pnand %p701_p11, %p698_p10 }
  0x3a   :  { %706 = shalt.err (!%p703_p12)
}
  0x3b   :  { %s707_s1 = scalar_lea.vmem %s837_s30, 1024  ;;  %p712_p0 = scmp.lt.s32.totalorder %s837_s30, %s837_s30 }
  0x3c   :  { %p708_p13 = scmp.ne.s32.totalorder %s837_s30, %s707_s1  ;;  %p713_p1 = scmp.lt.s32.totalorder %s707_s1, %s707_s1 }
  0x3e   :  { %p714_p2 = por %p713_p1, %p712_p0 }
  0x40   :  { %p715_p3 = pnand %p714_p2, %p708_p13 }
  0x42   :  { %718 = shalt.err (!%p715_p3)
}
  0x43   :  { %67 = dma.hbm_to_vmem [thread:$0]  %s930_s5, 1024, %s837_s30, [#allocation9], %s751_s13, %s751_s13, %s752_s14  }
  0x44   :  { %741 = dma.done.wait [#allocation3], 128  }
  0x45   :  { %742 = vsyncadd [#allocation3], 4294967168 }
  0x46   :  { %743 = dma.done.wait [#allocation6], 2048  }
  0x47   :  { %744 = vsyncadd [#allocation6], 4294965248 }
  0x48   :  { %745 = dma.done.wait [#allocation9], 1024  }
  0x49   :  { %746 = vsyncadd [#allocation9], 4294966272  ;;  %v755_v0 = vmov 0.0   ;;  %vm756_vm0 = vmmov 0   ;;  %v598_v1 = vld [vmem:[#allocation5] sm:$0xff]   ;;  %v599_v2 = vld [vmem:[#allocation5 + $0x8] sm:$0xff]  }
  0x4a   :  { %527 = vmatprep.subr.bf16.mxu0 %v755_v0  ;;  %543 = vmatprep.mubr.msk.bf16.mxu0 %vm756_vm0, %v755_v0  ;;  %v600_v3 = vld [vmem:[#allocation5 + $0x10] sm:$0xff]   ;;  %v607_v4 = vld [vmem:[#allocation7] sm:$0xff]   ;;  %v601_v5 = vld [vmem:[#allocation5 + $0x18] sm:$0xff]  }
  0x4b   :  { %547 = vmatprep.subr.bf16.mxu1 %v755_v0  ;;  %563 = vmatprep.mubr.msk.bf16.mxu1 %vm756_vm0, %v755_v0  ;;  %v608_v6 = vld [vmem:[#allocation7 + $0x8] sm:$0xff]   ;;  %v602_v7 = vld [vmem:[#allocation5 + $0x20] sm:$0xff]   ;;  %v609_v8 = vld [vmem:[#allocation7 + $0x10] sm:$0xff]  }
  0x4c   :  { %528 = vmatpush3.bf16.msra.mxu0 %v598_v1  ;;  %548 = vmatpush3.bf16.msra.mxu1 %v607_v4  ;;  %v603_v9 = vld [vmem:[#allocation5 + $0x28] sm:$0xff]   ;;  %v610_v10 = vld [vmem:[#allocation7 + $0x18] sm:$0xff]   ;;  %v604_v11 = vld [vmem:[#allocation5 + $0x30] sm:$0xff]  }
  0x4d   :  { %529 = vmatprep.subr.bf16.mxu0 %v755_v0  ;;  %549 = vmatprep.subr.bf16.mxu1 %v755_v0  ;;  %v611_v12 = vld [vmem:[#allocation7 + $0x20] sm:$0xff]   ;;  %v605_v13 = vld [vmem:[#allocation5 + $0x38] sm:$0xff]   ;;  %v612_v14 = vld [vmem:[#allocation7 + $0x28] sm:$0xff]  }
  0x4e   :  { %v606_v15 = vld [vmem:[#allocation2] sm:$0xff]   ;;  %v613_v16 = vld [vmem:[#allocation7 + $0x30] sm:$0xff]   ;;  %v615_v18 = vld [vmem:[#allocation8] sm:$0xff]  }
  0x4f   :  { %v614_v17 = vld [vmem:[#allocation7 + $0x38] sm:$0xff]   ;;  %v616_v19 = vld [vmem:[#allocation8 + $0x8] sm:$0xff]   ;;  %v617_v20 = vld [vmem:[#allocation8 + $0x10] sm:$0xff]  }
  0x50   :  { %530 = vmatpush3.bf16.msra.mxu0 %v599_v2  ;;  %550 = vmatpush3.bf16.msra.mxu1 %v608_v6  ;;  %v618_v21 = vld [vmem:[#allocation8 + $0x18] sm:$0xff]   ;;  %v619_v22 = vld [vmem:[#allocation8 + $0x20] sm:$0xff]   ;;  %v620_v23 = vld [vmem:[#allocation8 + $0x28] sm:$0xff]  }
  0x51   :  { %531 = vmatprep.subr.bf16.mxu0 %v755_v0  ;;  %551 = vmatprep.subr.bf16.mxu1 %v755_v0  ;;  %v472_v24 = vld [vmem:[%s927_s2] ss:$0 sm:$0xff]  ;;  %v621_v34 = vld [vmem:[#allocation8 + $0x30] sm:$0xff]  }
  0x52   :  { %v622_v35 = vld [vmem:[#allocation8 + $0x38] sm:$0xff]  }
  0x53   :  { %v482_v36 = vld [vmem:[%s929_s4] ss:$0 sm:$0xff]  ;;  %s757_s4 = smov [#allocation10]  }
  0x54   :  { %532 = vmatpush3.bf16.msra.mxu0 %v600_v3  ;;  %552 = vmatpush3.bf16.msra.mxu1 %v609_v8  ;;  %v491_v46 = vld [vmem:[%s931_s6] ss:$0 sm:$0xff]  ;;  %s458_s6 = sshll.u32 %s757_s4, 4  ;;  %s459_s6 = int_to_ptr.vmem [resolvable:$true] %s458_s6 }
  0x55   :  { %533 = vmatprep.subr.bf16.mxu0 %v755_v0  ;;  %553 = vmatprep.subr.bf16.mxu1 %v755_v0  ;;  %s719_s29 = scalar_lea.vmem %s459_s6, 256  ;;  %p724_p5 = scmp.lt.s32.totalorder %s459_s6, %s459_s6 }
  0x56   :  { %p720_p4 = scmp.ne.s32.totalorder %s459_s6, %s719_s29  ;;  %p725_p6 = scmp.lt.s32.totalorder %s719_s29, %s719_s29 }
  0x58   :  { %534 = vmatpush3.bf16.msra.mxu0 %v601_v5  ;;  %554 = vmatpush3.bf16.msra.mxu1 %v610_v10  ;;  %p726_p7 = por %p725_p6, %p724_p5 }
  0x59   :  { %535 = vmatprep.subr.bf16.mxu0 %v755_v0  ;;  %555 = vmatprep.subr.bf16.mxu1 %v755_v0 }
  0x5a   :  { %p727_p8 = pnand %p726_p7, %p720_p4 }
  0x5c   :  { %536 = vmatpush3.bf16.msra.mxu0 %v602_v7  ;;  %556 = vmatpush3.bf16.msra.mxu1 %v611_v12 }
  0x5d   :  { %537 = vmatprep.subr.bf16.mxu0 %v755_v0  ;;  %557 = vmatprep.subr.bf16.mxu1 %v755_v0 }
  0x60   :  { %538 = vmatpush3.bf16.msra.mxu0 %v603_v9  ;;  %558 = vmatpush3.bf16.msra.mxu1 %v612_v14 }
  0x61   :  { %539 = vmatprep.subr.bf16.mxu0 %v755_v0  ;;  %559 = vmatprep.subr.bf16.mxu1 %v755_v0 }
  0x64   :  { %540 = vmatpush3.bf16.msra.mxu0 %v604_v11  ;;  %560 = vmatpush3.bf16.msra.mxu1 %v613_v16 }
  0x65   :  { %541 = vmatprep.subr.bf16.mxu0 %v755_v0  ;;  %561 = vmatprep.subr.bf16.mxu1 %v755_v0 }
  0x68   :  { %542 = vmatpush3.bf16.msra.mxu0 %v605_v13  ;;  %562 = vmatpush3.bf16.msra.mxu1 %v614_v17 }
  0x69   :  { %567 = vmatprep.subr.bf16.mxu0 %v755_v0 }
  0x6b   :  { %544 = vmatmul.mubr.bf16.vlgmr.msra.gmra.mrb[0].mxu0 %v606_v15 }
  0x6c   :  { %583 = vmatprep.mubr.msk.bf16.mxu0 %vm756_vm0, %v755_v0  ;;  %568 = vmatpush3.bf16.msra.mxu0 %v615_v18 }
  0x6d   :  { %569 = vmatprep.subr.bf16.mxu0 %v755_v0 }
  0x70   :  { %570 = vmatpush3.bf16.msra.mxu0 %v616_v19 }
  0x71   :  { %571 = vmatprep.subr.bf16.mxu0 %v755_v0 }
  0x74   :  { %572 = vmatpush3.bf16.msra.mxu0 %v617_v20 }
  0x75   :  { %573 = vmatprep.subr.bf16.mxu0 %v755_v0 }
  0x78   :  { %574 = vmatpush3.bf16.msra.mxu0 %v618_v21 }
  0x79   :  { %575 = vmatprep.subr.bf16.mxu0 %v755_v0 }
  0x7c   :  { %576 = vmatpush3.bf16.msra.mxu0 %v619_v22 }
  0x7d   :  { %577 = vmatprep.subr.bf16.mxu0 %v755_v0 }
  0x80   :  { %578 = vmatpush3.bf16.msra.mxu0 %v620_v23 }
  0x81   :  { %579 = vmatprep.subr.bf16.mxu0 %v755_v0 }
  0x84   :  { %580 = vmatpush3.bf16.msra.mxu0 %v621_v34 }
  0x85   :  { %581 = vmatprep.subr.bf16.mxu0 %v755_v0 }
  0x88   :  { %582 = vmatpush3.bf16.msra.mxu0 %v622_v35 }
 0x13e   :  { %v196_v25 = vpop.f32.mrb[0].mxu0 }
 0x13f   :  { %v197_v26 = vadd.f32 %v472_v24, %v196_v25  ;;  %v545_v27 = vpop.f32.mrb[1].mxu0 }
 0x140   :  { %v199_v28 = vpop.f32.mrb[2].mxu0 }
 0x141   :  { %v200_v29 = vadd.f32 %v472_v24, %v199_v28  ;;  %v546_v30 = vpop.f32.mrb[3].mxu0  ;;  %v203_v31 = vmax.f32 %v197_v26, 0.0 }
 0x143   :  { %v204_v32 = vmax.f32 %v200_v29, 0.0 }
 0x145   :  { %v205_v33 = vpack.c.bf16 %v204_v32, %v203_v31 }
 0x147   :  { %564 = vmatmul.mubr.bf16.vlgmr.msra.gmra.mrb[0].mxu1 %v205_v33 }
 0x21a   :  { %v311_v37 = vpop.f32.mrb[0].mxu1 }
 0x21b   :  { %v312_v38 = vadd.f32 %v482_v36, %v311_v37  ;;  %v565_v39 = vpop.f32.mrb[1].mxu1 }
 0x21c   :  { %v314_v40 = vpop.f32.mrb[2].mxu1 }
 0x21d   :  { %v315_v41 = vadd.f32 %v482_v36, %v314_v40  ;;  %v566_v42 = vpop.f32.mrb[3].mxu1  ;;  %v318_v43 = vmax.f32 %v312_v38, 0.0 }
 0x21f   :  { %v319_v44 = vmax.f32 %v315_v41, 0.0 }
 0x221   :  { %v320_v45 = vpack.c.bf16 %v319_v44, %v318_v43 }
 0x223   :  { %584 = vmatmul.mubr.bf16.vlgmr.msra.gmra.mrb[4].mxu0 %v320_v45 }
 0x2f6   :  { %v426_v47 = vpop.f32.mrb[4].mxu0 }
 0x2f7   :  { %v427_v48 = vadd.f32 %v491_v46, %v426_v47  ;;  %v585_v49 = vpop.f32.mrb[5].mxu0 }
 0x2f8   :  { %v429_v50 = vpop.f32.mrb[6].mxu0 }
 0x2f9   :  { %v433_v51 = vand.u32 2147483647, %v427_v48  ;;  %v430_v52 = vadd.f32 %v491_v46, %v429_v50  ;;  %v586_v53 = vpop.f32.mrb[7].mxu0  ;;  %vm445_vm1 = vcmp.ge.f32.partialorder %v427_v48, 0.0 }
 0x2fb   :  { %v435_v54 = vsub.f32 0.0, %v433_v51  ;;  %v434_v55 = vand.u32 2147483647, %v430_v52  ;;  %vm446_vm2 = vcmp.ge.f32.partialorder %v430_v52, 0.0 }
 0x2fd   :  { %v437_v56 = vmul.f32 1.442695, %v435_v54  ;;  %v436_v57 = vsub.f32 0.0, %v434_v55 }
 0x2ff   :  { %623 = vpow2.f32 %v437_v56  ;;  %v439_v58 = vmul.f32 1.442695, %v436_v57 }
 0x301   :  { %625 = vpow2.f32 %v439_v58 }
 0x309   :  { %v624_v59 = vpop.eup %623 }
 0x30a   :  { %v441_v60 = vadd.f32 1.0, %v624_v59 }
 0x30b   :  { %v626_v61 = vpop.eup %625 }
 0x30c   :  { %627 = vrcp.f32 %v441_v60  ;;  %v442_v62 = vadd.f32 1.0, %v626_v61 }
 0x30e   :  { %629 = vrcp.f32 %v442_v62 }
 0x316   :  { %v628_v63 = vpop.eup %627 }
 0x317   :  { %v447_v0 = vsub.f32 1.0, %v628_v63 }
 0x318   :  { %v630_v1 = vpop.eup %629 }
 0x319   :  { %v449_v2 = vsel %vm445_vm1, %v628_v63, %v447_v0  ;;  %v448_v3 = vsub.f32 1.0, %v630_v1 }
 0x31a   :  { %451 = vst [vmem:[#allocation10] sm:$0xff] %v449_v2 }
 0x31b   :  { %v450_v4 = vsel %vm446_vm2, %v630_v1, %v448_v3 }
 0x31c   :  { %452 = vst [vmem:[#allocation10 + $0x8] sm:$0xff] %v450_v4 }
 0x31d   :  { %730 = shalt.err (!%p727_p8)
}
 0x31e   :  { %s731_s9 = scalar_lea.hbm %s932_s7, 256 }
 0x31f   :  { %p732_p9 = scmp.ne.s32.totalorder %s932_s7, %s731_s9  ;;  %p735_p10 = scmp.lt.u32.totalorder %s731_s9, %s932_s7 }
 0x321   :  { %p737_p11 = pnand %p735_p10, %p732_p9 }
 0x323   :  { %740 = shalt.err (!%p737_p11)
}
 0x324   :  { %s758_s16 = smov 128   ;;  %s759_s0 = smov 8  }
 0x325   :  { %464 = dma.vmem_to_hbm [thread:$0]  %s459_s6, 256, %s932_s7, [#allocation4], %s758_s16, %s758_s16, %s759_s0  }
 0x326   :  { %747 = dma.done.wait [#allocation4], 256  }
 0x327   :  { %748 = vsyncadd [#allocation4], 4294967040 }
 0x328   :  { %468 = vsyncpa [#allocation3], 1 }
 0x329   :  { %469 = vsyncpa [#allocation6], 1 }
 0x32a   :  { %470 = vsyncpa [#allocation9], 1 }
 0x32b   :  { %471 = vsyncpa [#allocation4], 1 }

</bundles_post_ra>
